<compile_context>
chip_gen: v7x
topology: tpu7x:2x2x1
jax: 0.10.0
libtpu: 0.0.40
codegen_flags: <defaults>
</compile_context>

<pallas_src>
import jax
import jax.numpy as jnp
from jax import lax
from jax.experimental import pallas as pl
from jax.experimental.pallas import tpu as pltpu


def _round_up(n, m):
    return ((n + m - 1) // m) * m


def _cdiv(a, b):
    return (a + b - 1) // b


def _make_to_basis_kernel(tile_v, n_inner, n_valid_rows):
    """Builds the V-tiled reduction kernel: partial x_spec = evecs_tile^T @ (x_tile * mass)."""

    def kernel(x_ref, mass_ref, evecs_ref, spec_ref):
        i = pl.program_id(1)

        @pl.when(i == 0)
        def _():
            spec_ref[...] = jnp.zeros_like(spec_ref)

        # Global row ids of this (possibly clamped / partial) tile; rows past the
        # true V (ragged last tile or clamped overflow step) are zeroed so they
        # contribute nothing to the reduction.
        t = pl.program_id(0) * n_inner + i
        rows = t * tile_v + lax.broadcasted_iota(jnp.int32, (tile_v, 1), 0)
        valid = rows < n_valid_rows

        # Mass multiply in f32 inside the kernel (no wrapper materialization).
        xm = x_ref[...].astype(jnp.float32) * mass_ref[...]          # (TV, C)
        xm = jnp.where(valid, xm, 0.0)
        ev = jnp.where(valid, evecs_ref[...].astype(jnp.float32), 0.0)  # (TV, K)

        # Contract the V-tile axis (dim 0 of both operands) on the MXU — no
        # in-kernel transpose / XLU copy.  Result (K, C), accumulated in f32.
        spec_ref[...] += lax.dot_general(
            ev, xm,
            dimension_numbers=(((0,), (0,)), ((), ())),
            preferred_element_type=jnp.float32)[None]

    return kernel


def _from_basis_kernel(spec_ref, evecs_ref, out_ref):
    """out_tile = evecs_tile @ x_diffuse_spec."""
    out_ref[...] = jnp.dot(
        evecs_ref[...].astype(jnp.float32), spec_ref[...],
        preferred_element_type=jnp.float32).astype(out_ref.dtype)


def learned_time_diffusion(x, mass, evals, evecs, diffusion_time, *,
                           tile_v=8192, num_splits=2):
    """Spectral LearnedTimeDiffusion forward.

    x: (V, C)   mass: (V,)   evals: (K,)   evecs: (V, K)   diffusion_time: (C,)
    returns (V, C) in x.dtype
    """
    V, C = x.shape
    K = evals.shape[0]
    assert evecs.shape == (V, K)
    assert mass.shape == (V,)
    assert diffusion_time.shape == (C,)
    out_dtype = x.dtype

    # torch.clamp(diffusion_time, min=1e-8)
    time = jnp.maximum(diffusion_time.astype(jnp.float32), 1e-8)

    # V tile: either the whole V axis (block dim == full dim is always legal,
    # even when V is not a sublane multiple) or a multiple-of-8 tile.
    TV = max(8, min(int(tile_v), V))
    if TV < V:
        TV = _round_up(TV, 8)
    if TV >= V:
        TV = V
    n_tiles = _cdiv(V, TV)

    # Phase-1 reduction split across a leading "parallel" axis (dual TC on v7x;
    # harmless serial loop on single-TC v5e/v6e).
    ns = max(1, min(int(num_splits), n_tiles))
    n_inner = _cdiv(n_tiles, ns)

    mass_col = mass.reshape(V, 1).astype(jnp.float32)

    def v_tile_map(s, i):
        # The last split may own fewer tiles; overflow steps re-read the final
        # tile and are fully masked inside the kernel.
        return (jnp.minimum(s * n_inner + i, n_tiles - 1), 0)

    # --- Phase 1: partial spectral coefficients, reduction over V tiles. -----
    partial_spec = pl.pallas_call(
        _make_to_basis_kernel(TV, n_inner, V),
        out_shape=jax.ShapeDtypeStruct((ns, K, C), jnp.float32),
        grid_spec=pltpu.PrefetchScalarGridSpec(
            num_scalar_prefetch=0,
            grid=(ns, n_inner),
            in_specs=[
                pl.BlockSpec((TV, C), v_tile_map),   # x tile (unpadded C)
                pl.BlockSpec((TV, 1), v_tile_map),   # mass column
                pl.BlockSpec((TV, K), v_tile_map),   # evecs tile (unpadded K)
            ],
            out_specs=pl.BlockSpec((1, K, C), lambda s, i: (s, 0, 0)),
        ),
        compiler_params=pltpu.CompilerParams(
            dimension_semantics=("parallel", "arbitrary")),
    )(x, mass_col, evecs)

    # Tiny (K, C) work stays in the wrapper: sum the split partials and apply
    # the learned-time diffusion coefficients once.
    x_spec = jnp.sum(partial_spec, axis=0)
    coefs = jnp.exp(-evals.astype(jnp.float32)[:, None] * time[None, :])
    x_diffuse_spec = coefs * x_spec

    # --- Phase 2: out = evecs @ x_diffuse_spec, independent over V tiles. ----
    out = pl.pallas_call(
        _from_basis_kernel,
        out_shape=jax.ShapeDtypeStruct((V, C), out_dtype),
        grid_spec=pltpu.PrefetchScalarGridSpec(
            num_scalar_prefetch=0,
            grid=(n_tiles,),
            in_specs=[
                pl.BlockSpec((K, C), lambda i: (0, 0)),    # resident spectral block
                pl.BlockSpec((TV, K), lambda i: (i, 0)),   # evecs tile
            ],
            out_specs=pl.BlockSpec((TV, C), lambda i: (i, 0)),
        ),
        compiler_params=pltpu.CompilerParams(
            dimension_semantics=("parallel",)),
    )(x_diffuse_spec, evecs)

    return out


def _reference(x, mass, evals, evecs, diffusion_time):
    time = jnp.maximum(diffusion_time, 1e-8)
    x_spec = evecs.T @ (x * mass[:, None])
    coefs = jnp.exp(-evals[:, None] * time[None, :])
    return evecs @ (coefs * x_spec)


if __name__ == "__main__":
    # Small shapes consistent with the module: V vertices, K eigenpairs, C channels.
    # V is deliberately not a multiple of 8 / the tile size to exercise the
    # ragged-tile masking and multi-tile accumulation paths.
    V, K, C = 300, 32, 16
    key = jax.random.PRNGKey(0)
    k1, k2, k3, k4, k5 = jax.random.split(key, 5)

    x = jax.random.normal(k1, (V, C), dtype=jnp.float32)
    evecs = jax.random.normal(k2, (V, K), dtype=jnp.float32) / jnp.sqrt(V)
    mass = jax.random.uniform(k3, (V,), dtype=jnp.float32, minval=0.5, maxval=1.5)
    evals = jax.random.uniform(k4, (K,), dtype=jnp.float32, minval=0.0, maxval=10.0)
    # nn.init.constant_(diffusion_time, 0.0); perturb slightly but deterministically.
    diffusion_time = 0.01 * jax.random.uniform(k5, (C,), dtype=jnp.float32)

    ref = _reference(x, mass, evals, evecs, diffusion_time)

    # Default path: single full-V block (TV == V).
    out1 = jax.block_until_ready(
        learned_time_diffusion(x, mass, evals, evecs, diffusion_time))
    # Multi-tile path: exercises the V-tiled reduction, the dual-split partial
    # accumulators, ragged-tile masking and tile-index clamping.
    out2 = jax.block_until_ready(
        learned_time_diffusion(x, mass, evals, evecs, diffusion_time, tile_v=128))

    assert out1.shape == (V, C) and out2.shape == (V, C)
    assert jnp.allclose(out1, ref, atol=1e-4, rtol=1e-4)
    assert jnp.allclose(out2, ref, atol=1e-4, rtol=1e-4)

    print("KERNEL_OK")
</pallas_src>

<mosaic_0001>
module attributes {stable_mosaic.version = 11 : i64} {
  func.func @kernel(%arg0: i32, %arg1: i32, %arg2: memref<300x16xf32, #tpu.memory_space<vmem>>, %arg3: memref<300x1xf32, #tpu.memory_space<vmem>>, %arg4: memref<300x32xf32, #tpu.memory_space<vmem>>, %arg5: memref<1x32x16xf32, #tpu.memory_space<vmem>>) attributes {dimension_semantics = [#tpu.dimension_semantics<parallel>, #tpu.dimension_semantics<arbitrary>], iteration_bounds = array<i64: 1, 1>, scalar_prefetch = 0 : i64, scratch_operands = 0 : i64, tpu.core_type = #tpu.core_type<tc>, window_params = [{transform_indices = @transform_0, window_bounds = array<i64: 300, 16>}, {transform_indices = @transform_1, window_bounds = array<i64: 300, 1>}, {transform_indices = @transform_2, window_bounds = array<i64: 300, 32>}, {transform_indices = @transform_3, window_bounds = array<i64: 1, 32, 16>}]} {
    %c0_i32 = arith.constant 0 : i32
    %0 = arith.cmpi eq, %arg1, %c0_i32 : i32
    %1 = arith.extui %0 : i1 to i32
    %c0_i32_0 = arith.constant 0 : i32
    %2 = arith.cmpi ne, %1, %c0_i32_0 : i32
    scf.if %2 {
      %cst_15 = arith.constant 0.000000e+00 : f32
      %29 = vector.broadcast %cst_15 : f32 to vector<1x32x16xf32>
      %c0_16 = arith.constant 0 : index
      %c0_17 = arith.constant 0 : index
      %c0_18 = arith.constant 0 : index
      %30 = vector.load %arg5[%c0_16, %c0_17, %c0_18] : memref<1x32x16xf32, #tpu.memory_space<vmem>>, vector<1x32x16xf32>
      tpu.vector_store %arg5[%c0_16, %c0_17, %c0_18], %29 {strides = array<i32>} : memref<1x32x16xf32, #tpu.memory_space<vmem>>, vector<1x32x16xf32>,
    } else {
    }
    %c1_i32 = arith.constant 1 : i32
    %3 = arith.muli %arg0, %c1_i32 : i32
    %4 = arith.addi %3, %arg1 : i32
    %c300_i32 = arith.constant 300 : i32
    %5 = arith.muli %4, %c300_i32 : i32
    %6 = tpu.iota {dimensions = array<i32: 0>} : vector<300x1xi32>
    %7 = vector.broadcast %5 : i32 to vector<300x1xi32>
    %8 = arith.addi %7, %6 : vector<300x1xi32>
    %c300_i32_1 = arith.constant 300 : i32
    %9 = vector.broadcast %c300_i32_1 : i32 to vector<300x1xi32>
    %10 = arith.cmpi slt, %8, %9 : vector<300x1xi32>
    %c0 = arith.constant 0 : index
    %c0_2 = arith.constant 0 : index
    %11 = vector.load %arg2[%c0, %c0_2] : memref<300x16xf32, #tpu.memory_space<vmem>>, vector<300x16xf32>
    %c0_3 = arith.constant 0 : index
    %c0_4 = arith.constant 0 : index
    %12 = vector.load %arg3[%c0_3, %c0_4] : memref<300x1xf32, #tpu.memory_space<vmem>>, vector<300x1xf32>
    %13 = vector.broadcast %12 : vector<300x1xf32> to vector<300x16xf32>
    %14 = arith.mulf %11, %13 : vector<300x16xf32>
    %cst = arith.constant 0.000000e+00 : f32
    %15 = vector.shape_cast %10 : vector<300x1xi1> to vector<300x1xi1>
    %16 = vector.broadcast %15 : vector<300x1xi1> to vector<300x16xi1>
    %17 = vector.broadcast %cst : f32 to vector<300x16xf32>
    %18 = arith.select %16, %14, %17 : vector<300x16xi1>, vector<300x16xf32>
    %c0_5 = arith.constant 0 : index
    %c0_6 = arith.constant 0 : index
    %19 = vector.load %arg4[%c0_5, %c0_6] : memref<300x32xf32, #tpu.memory_space<vmem>>, vector<300x32xf32>
    %cst_7 = arith.constant 0.000000e+00 : f32
    %20 = vector.shape_cast %10 : vector<300x1xi1> to vector<300x1xi1>
    %21 = vector.broadcast %20 : vector<300x1xi1> to vector<300x32xi1>
    %22 = vector.broadcast %cst_7 : f32 to vector<300x32xf32>
    %23 = arith.select %21, %19, %22 : vector<300x32xi1>, vector<300x32xf32>
    %c0_8 = arith.constant 0 : index
    %c0_9 = arith.constant 0 : index
    %c0_10 = arith.constant 0 : index
    %24 = vector.load %arg5[%c0_8, %c0_9, %c0_10] : memref<1x32x16xf32, #tpu.memory_space<vmem>>, vector<1x32x16xf32>
    %cst_11 = arith.constant dense<0.000000e+00> : vector<32x16xf32>
    %25 = tpu.matmul %23, %18, %cst_11 {dimension_numbers = #tpu.dot_dimension_numbers<[0], [0], [1], [1], [0, 1, 1, 1], [], []>} : vector<300x32xf32>, vector<300x16xf32>, vector<32x16xf32> -> vector<32x16xf32>
    %26 = vector.shape_cast %25 : vector<32x16xf32> to vector<1x32x16xf32>
    %27 = arith.addf %24, %26 : vector<1x32x16xf32>
    %c0_12 = arith.constant 0 : index
    %c0_13 = arith.constant 0 : index
    %c0_14 = arith.constant 0 : index
    %28 = vector.load %arg5[%c0_12, %c0_13, %c0_14] : memref<1x32x16xf32, #tpu.memory_space<vmem>>, vector<1x32x16xf32>
    tpu.vector_store %arg5[%c0_12, %c0_13, %c0_14], %27 {strides = array<i32>} : memref<1x32x16xf32, #tpu.memory_space<vmem>>, vector<1x32x16xf32>,
    return
  }
  func.func @transform_0(%arg0: i32, %arg1: i32) -> (i32, i32) {
    %c1_i32 = arith.constant 1 : i32
    %0 = arith.muli %arg0, %c1_i32 : i32
    %1 = arith.addi %0, %arg1 : i32
    %c0_i32 = arith.constant 0 : i32
    %2 = arith.minsi %1, %c0_i32 : i32
    %c0_i32_0 = arith.constant 0 : i32
    %c0_i32_1 = arith.constant 0 : i32
    return %2, %c0_i32_0 : i32, i32
  }
  func.func @transform_1(%arg0: i32, %arg1: i32) -> (i32, i32) {
    %c1_i32 = arith.constant 1 : i32
    %0 = arith.muli %arg0, %c1_i32 : i32
    %1 = arith.addi %0, %arg1 : i32
    %c0_i32 = arith.constant 0 : i32
    %2 = arith.minsi %1, %c0_i32 : i32
    %c0_i32_0 = arith.constant 0 : i32
    %c0_i32_1 = arith.constant 0 : i32
    return %2, %c0_i32_0 : i32, i32
  }
  func.func @transform_2(%arg0: i32, %arg1: i32) -> (i32, i32) {
    %c1_i32 = arith.constant 1 : i32
    %0 = arith.muli %arg0, %c1_i32 : i32
    %1 = arith.addi %0, %arg1 : i32
    %c0_i32 = arith.constant 0 : i32
    %2 = arith.minsi %1, %c0_i32 : i32
    %c0_i32_0 = arith.constant 0 : i32
    %c0_i32_1 = arith.constant 0 : i32
    return %2, %c0_i32_0 : i32, i32
  }
  func.func @transform_3(%arg0: i32, %arg1: i32) -> (i32, i32, i32) {
    %c0_i32 = arith.constant 0 : i32
    %c0_i32_0 = arith.constant 0 : i32
    %c0_i32_1 = arith.constant 0 : i32
    return %arg0, %c0_i32, %c0_i32_0 : i32, i32, i32
  }
}

</mosaic_0001>

<bundles_post_ra>
// kernel: tpu_custom_call.1
= control target key start
LH: loop header
LB: loop body
LE: loop exit
PB: predicated region body
PF: predicated region fallthrough
CT: control target
= control target key end

     0   :  { %v1229_v0 = vmov 0   ;;  %v121_v58 = vlaneseq  ;;  %vm844_vm1 = vcmask 1043456   ;;  %vm1230_vm2 = vmmov 1   ;;  %s1649_s1 = inlined_call_operand.vmem [shape: f32[300,1], index: 1, kind: input, shape index: {}]   ;;  %s1650_s2 = inlined_call_operand.vmem [shape: f32[300,32], index: 2, kind: input, shape index: {}]   ;;  %s1651_s0 = inlined_call_operand.vmem [shape: f32[300,16], index: 0, kind: input, shape index: {}]   ;;  %s1652_s3 = inlined_call_operand.vmem [shape: f32[1,32,16], index: 3, kind: output, shape index: {}]  }
   0x1   :  { %1176 = vset.pattern.permute.xlu1 %v1229_v0  ;;  %1175 = vset.pattern.permute.xlu0 %v1229_v0  ;;  %v291_v1 = vld [vmem:[%s1649_s1 + $0x80] sm:$0xff]  ;;  %v292_v3 = vld [vmem:[%s1649_s1 + $0x88] sm:$0xff]  ;;  %v293_v5 = vld [vmem:[%s1649_s1 + $0x90] sm:$0xff]  ;;  %vm831_vm4 = vcmask 359424   ;;  %vm114_vm5 = vcmask 130048  }
   0x2   :  { %v275_v2 = vld [vmem:[%s1649_s1] sm:$0xff]  ;;  %395 = vperm.xlu0 %1175, %v291_v1   ;;  %v276_v4 = vld [vmem:[%s1649_s1 + $0x8] sm:$0xff]  ;;  %v294_v6 = vld [vmem:[%s1649_s1 + $0x98] sm:$0xff]  ;;  %v122_v63 = vshrl.u32 %v121_v58, 7 }
   0x3   :  { %315 = vperm.xlu1 %1176, %v275_v2   ;;  %v277_v7 = vld [vmem:[%s1649_s1 + $0x10] sm:$0xff]  ;;  %v278_v8 = vld [vmem:[%s1649_s1 + $0x18] sm:$0xff]  ;;  %v295_v9 = vld [vmem:[%s1649_s1 + $0xa0] sm:$0xff] }
   0x4   :  { %v296_v10 = vld [vmem:[%s1649_s1 + $0xa8] sm:$0xff]  ;;  %v279_v11 = vld [vmem:[%s1649_s1 + $0x20] sm:$0xff]  ;;  %v297_v13 = vld [vmem:[%s1649_s1 + $0xb0] sm:$0xff]  ;;  %v1420_v2 = vadd.s32 296, %v122_v63 }
   0x5   :  { %v280_v12 = vld [vmem:[%s1649_s1 + $0x28] sm:$0xff]  ;;  %v298_v14 = vld [vmem:[%s1649_s1 + $0xb8] sm:$0xff]  ;;  %v281_v15 = vld [vmem:[%s1649_s1 + $0x30] sm:$0xff] }
   0x6   :  { %400 = vperm.xlu0 %1175, %v292_v3   ;;  %v282_v16 = vld [vmem:[%s1649_s1 + $0x38] sm:$0xff]  ;;  %v299_v17 = vld [vmem:[%s1649_s1 + $0xc0] sm:$0xff]  ;;  %v300_v18 = vld [vmem:[%s1649_s1 + $0xc8] sm:$0xff]  ;;  %vm236_vm0 = vcmp.lt.s32.totalorder %v1420_v2, 300 }
   0x7   :  { %320 = vperm.xlu1 %1176, %v276_v4   ;;  %v283_v19 = vld [vmem:[%s1649_s1 + $0x40] sm:$0xff]  ;;  %v284_v20 = vld [vmem:[%s1649_s1 + $0x48] sm:$0xff]  ;;  %v301_v21 = vld [vmem:[%s1649_s1 + $0xd0] sm:$0xff] }
   0x8   :  { %v302_v22 = vld [vmem:[%s1649_s1 + $0xd8] sm:$0xff]  ;;  %v285_v23 = vld [vmem:[%s1649_s1 + $0x50] sm:$0xff]  ;;  %v303_v25 = vld [vmem:[%s1649_s1 + $0xe0] sm:$0xff] }
   0x9   :  { %v286_v24 = vld [vmem:[%s1649_s1 + $0x58] sm:$0xff]  ;;  %v304_v26 = vld [vmem:[%s1649_s1 + $0xe8] sm:$0xff]  ;;  %v287_v27 = vld [vmem:[%s1649_s1 + $0x60] sm:$0xff] }
   0xa   :  { %405 = vperm.xlu0 %1175, %v293_v5   ;;  %v288_v28 = vld [vmem:[%s1649_s1 + $0x68] sm:$0xff]  ;;  %v305_v29 = vld [vmem:[%s1649_s1 + $0xf0] sm:$0xff]  ;;  %v306_v30 = vld [vmem:[%s1649_s1 + $0xf8] sm:$0xff] }
   0xb   :  { %410 = vperm.xlu1 %1176, %v294_v6   ;;  %v289_v31 = vld [vmem:[%s1649_s1 + $0x70] sm:$0xff]  ;;  %v290_v32 = vld [vmem:[%s1649_s1 + $0x78] sm:$0xff]  ;;  %v307_v33 = vld [vmem:[%s1649_s1 + $0x100] sm:$0xff] }
   0xc   :  { %v308_v34 = vld [vmem:[%s1649_s1 + $0x108] sm:$0xff]  ;;  %v309_v35 = vld [vmem:[%s1649_s1 + $0x110] sm:$0xff]  ;;  %v310_v36 = vld [vmem:[%s1649_s1 + $0x118] sm:$0xff] }
   0xd   :  { %v312_v37 = vld [vmem:[%s1649_s1 + $0x128] sm:$0xf]  ;;  %v311_v38 = vld [vmem:[%s1649_s1 + $0x120] sm:$0xff]  ;;  %v657_v45 = vld [vmem:[%s1650_s2 + $0x10] sm:$0xff] }
   0xe   :  { %325 = vperm.xlu0 %1175, %v277_v7   ;;  %v655_v39 = vld [vmem:[%s1650_s2] sm:$0xff]  ;;  %v656_v42 = vld [vmem:[%s1650_s2 + $0x8] sm:$0xff]  ;;  %v673_v46 = vld [vmem:[%s1650_s2 + $0x90] sm:$0xff] }
   0xf   :  { %330 = vperm.xlu1 %1176, %v278_v8   ;;  %v671_v40 = vld [vmem:[%s1650_s2 + $0x80] sm:$0xff]  ;;  %v672_v43 = vld [vmem:[%s1650_s2 + $0x88] sm:$0xff]  ;;  %v1181_v47 = vpack.i.bf16 %v657_v45, %v673_v46  ;;  %v658_v48 = vld [vmem:[%s1650_s2 + $0x18] sm:$0xff] }
  0x10   :  { %v1177_v41 = vpack.i.bf16 %v655_v39, %v671_v40  ;;  %v1179_v44 = vpack.i.bf16 %v656_v42, %v672_v43  ;;  %v674_v49 = vld [vmem:[%s1650_s2 + $0x98] sm:$0xff]  ;;  %v687_v50 = vld [vmem:[%s1650_s2 + $0x100] sm:$0xff]  ;;  %v688_v54 = vld [vmem:[%s1650_s2 + $0x108] sm:$0xff] }
  0x11   :  { %v1183_v51 = vpack.i.bf16 %v658_v48, %v674_v49  ;;  %v659_v52 = vld [vmem:[%s1650_s2 + $0x20] sm:$0xff]  ;;  %v660_v56 = vld [vmem:[%s1650_s2 + $0x28] sm:$0xff]  ;;  %v689_v59 = vld [vmem:[%s1650_s2 + $0x110] sm:$0xff] }
  0x12   :  { %415 = vperm.xlu0 %1175, %v295_v9   ;;  %v675_v53 = vld [vmem:[%s1650_s2 + $0xa0] sm:$0xff]  ;;  %v676_v57 = vld [vmem:[%s1650_s2 + $0xa8] sm:$0xff]  ;;  %v661_v61 = vld [vmem:[%s1650_s2 + $0x30] sm:$0xff] }
  0x13   :  { %420 = vperm.xlu1 %1176, %v296_v10   ;;  %v1185_v55 = vpack.i.bf16 %v659_v52, %v675_v53  ;;  %v1187_v60 = vpack.i.bf16 %v660_v56, %v676_v57  ;;  %v677_v62 = vld [vmem:[%s1650_s2 + $0xb0] sm:$0xff]  ;;  %v690_v0 = vld [vmem:[%s1650_s2 + $0x118] sm:$0xff]  ;;  %v253_v5 = vld [vmem:[%s1651_s0 + $0x80] sm:$0xff] }
  0x14   :  { %v1189_v1 = vpack.i.bf16 %v661_v61, %v677_v62  ;;  %v662_v3 = vld [vmem:[%s1650_s2 + $0x38] sm:$0xff]  ;;  %v691_v6 = vld [vmem:[%s1650_s2 + $0x120] sm:$0xff]  ;;  %v692_v10 = vld [vmem:[%s1650_s2 + $0x128] sm:$0xf] }
  0x15   :  { %v678_v4 = vld [vmem:[%s1650_s2 + $0xb8] sm:$0xff]  ;;  %v258_v48 = vld [vmem:[%s1651_s0 + $0xa8] sm:$0xff]  ;;  %v667_v53 = vld [vmem:[%s1650_s2 + $0x60] sm:$0xff] }
  0x16   :  { %335 = vperm.xlu0 %1175, %v279_v11   ;;  %v1191_v7 = vpack.i.bf16 %v662_v3, %v678_v4  ;;  %v663_v11 = vld [vmem:[%s1650_s2 + $0x40] sm:$0xff]  ;;  %v666_v43 = vld [vmem:[%s1650_s2 + $0x58] sm:$0xff]  ;;  %v242_v58 = vld [vmem:[%s1651_s0 + $0x28] sm:$0xff] }
  0x17   :  { %340 = vperm.xlu1 %1176, %v280_v12   ;;  %v679_v12 = vld [vmem:[%s1650_s2 + $0xc0] sm:$0xff]  ;;  %v668_v63 = vld [vmem:[%s1650_s2 + $0x68] sm:$0xff]  ;;  %v259_v4 = vld [vmem:[%s1651_s0 + $0xb0] sm:$0xff] }
  0x18   :  { %v241_v57 = vld [vmem:[%s1651_s0 + $0x20] sm:$0xff]  ;;  %vm1167_vm3 = vmpackc.low %vm844_vm1, %vm1230_vm2 }
  0x1a   :  { %425 = vperm.xlu0 %1175, %v297_v13   ;;  %v237_v13 = vld [vmem:[%s1651_s0] sm:$0xff] }
  0x1b   :  { %430 = vperm.xlu1 %1176, %v298_v14   ;;  %v254_v14 = vld [vmem:[%s1651_s0 + $0x88] sm:$0xff] }
  0x1e   :  { %345 = vperm.xlu0 %1175, %v281_v15   ;;  %v238_v15 = vld [vmem:[%s1651_s0 + $0x8] sm:$0xff] }
  0x1f   :  { %350 = vperm.xlu1 %1176, %v282_v16  }
  0x22   :  { %435 = vperm.xlu0 %1175, %v299_v17   ;;  %v730_v17 = vsel %vm236_vm0, %v692_v10, 0.0  ;;  %v669_v10 = vld [vmem:[%s1650_s2 + $0x70] sm:$0xff] }
  0x23   :  { %440 = vperm.xlu1 %1176, %v300_v18   ;;  %v1193_v18 = vpack.i.bf16 %v663_v11, %v679_v12  ;;  %v685_v11 = vld [vmem:[%s1650_s2 + $0xf0] sm:$0xff] }
  0x26   :  { %355 = vperm.xlu0 %1175, %v283_v19  }
  0x27   :  { %360 = vperm.xlu1 %1176, %v284_v20  }
  0x2a   :  { %445 = vperm.xlu0 %1175, %v301_v21   ;;  %v664_v21 = vld [vmem:[%s1650_s2 + $0x48] sm:$0xff] }
  0x2b   :  { %450 = vperm.xlu1 %1176, %v302_v22   ;;  %v680_v22 = vld [vmem:[%s1650_s2 + $0xc8] sm:$0xff] }
  0x2e   :  { %365 = vperm.xlu0 %1175, %v285_v23  }
  0x2f   :  { %370 = vperm.xlu1 %1176, %v286_v24  }
  0x32   :  { %455 = vperm.xlu0 %1175, %v303_v25  }
  0x33   :  { %460 = vperm.xlu1 %1176, %v304_v26   ;;  %v255_v26 = vld [vmem:[%s1651_s0 + $0x90] sm:$0xff] }
  0x36   :  { %375 = vperm.xlu0 %1175, %v287_v27   ;;  %v256_v27 = vld [vmem:[%s1651_s0 + $0x98] sm:$0xff] }
  0x37   :  { %380 = vperm.xlu1 %1176, %v288_v28  }
  0x3a   :  { %465 = vperm.xlu0 %1175, %v305_v29  }
  0x3b   :  { %470 = vperm.xlu1 %1176, %v306_v30   ;;  %v1195_v30 = vpack.i.bf16 %v664_v21, %v680_v22  ;;  %v686_v21 = vld [vmem:[%s1650_s2 + $0xf8] sm:$0xff] }
  0x3e   :  { %385 = vperm.xlu0 %1175, %v289_v31  }
  0x3f   :  { %390 = vperm.xlu1 %1176, %v290_v32  }
  0x42   :  { %475 = vperm.xlu0 %1175, %v307_v33   ;;  %v665_v33 = vld [vmem:[%s1650_s2 + $0x50] sm:$0xff] }
  0x43   :  { %480 = vperm.xlu1 %1176, %v308_v34   ;;  %v681_v34 = vld [vmem:[%s1650_s2 + $0xd0] sm:$0xff] }
  0x44   :  { %v1197_v40 = vpack.i.bf16 %v665_v33, %v681_v34  ;;  %v246_v33 = vld [vmem:[%s1651_s0 + $0x48] sm:$0xff] }
  0x46   :  { %485 = vperm.xlu0 %1175, %v309_v35  }
  0x47   :  { %490 = vperm.xlu1 %1176, %v310_v36  }
  0x4a   :  { %500 = vperm.xlu0 %1175, %v312_v37   ;;  %v239_v37 = vld [vmem:[%s1651_s0 + $0x10] sm:$0xff] }
  0x4b   :  { %495 = vperm.xlu1 %1176, %v311_v38   ;;  %v240_v38 = vld [vmem:[%s1651_s0 + $0x18] sm:$0xff] }
  0x68   :  { %1178 = vxpose.xlu0.b32.start [1/16] (narrow) %v1177_v41, 32 }
  0x6c   :  { %1180 = vxpose.xlu0.b32.cont [2/16] (narrow) %v1179_v44, 32  ;;  %v682_v44 = vld [vmem:[%s1650_s2 + $0xd8] sm:$0xff] }
  0x70   :  { %1182 = vxpose.xlu0.b32.cont [3/16] (narrow) %v1181_v47, 32  ;;  %v257_v47 = vld [vmem:[%s1651_s0 + $0xa0] sm:$0xff] }
  0x74   :  { %799 = vxpose.xlu1.b32.start [1/6] (short) (narrow) %v687_v50, 32  ;;  %1184 = vxpose.xlu0.b32.cont [4/16] (narrow) %v1183_v51, 32  ;;  %v1199_v50 = vpack.i.bf16 %v666_v43, %v682_v44 }
  0x78   :  { %800 = vxpose.xlu1.b32.cont [2/6] (short) (narrow) %v688_v54, 32  ;;  %1186 = vxpose.xlu0.b32.cont [5/16] (narrow) %v1185_v55, 32  ;;  %v683_v54 = vld [vmem:[%s1650_s2 + $0xe0] sm:$0xff] }
  0x7c   :  { %801 = vxpose.xlu1.b32.cont [3/6] (short) (narrow) %v689_v59, 32  ;;  %1188 = vxpose.xlu0.b32.cont [6/16] (narrow) %v1187_v60, 32  ;;  %v1201_v60 = vpack.i.bf16 %v667_v53, %v683_v54  ;;  %v265_v53 = vld [vmem:[%s1651_s0 + $0xe0] sm:$0xff]  ;;  %v266_v54 = vld [vmem:[%s1651_s0 + $0xe8] sm:$0xff] }
  0x80   :  { %802 = vxpose.xlu1.b32.cont [4/6] (short) (narrow) %v690_v0, 32  ;;  %1190 = vxpose.xlu0.b32.cont [7/16] (narrow) %v1189_v1, 32  ;;  %v684_v0 = vld [vmem:[%s1650_s2 + $0xe8] sm:$0xff] }
  0x81   :  { %v396_v8 = vpop.permute.xlu0 %395 }
  0x82   :  { %v316_v9 = vpop.permute.xlu1 %315  ;;  %v519_v16 = vmul.f32 %v396_v8, %v253_v5  ;;  %v260_v5 = vld [vmem:[%s1651_s0 + $0xb8] sm:$0xff] }
  0x83   :  { %v503_v23 = vmul.f32 %v316_v9, %v237_v13 }
  0x84   :  { %803 = vxpose.xlu1.b32.cont [5/6] (short) (narrow) %v691_v6, 32  ;;  %1192 = vxpose.xlu0.b32.cont [8/16] (narrow) %v1191_v7, 32  ;;  %v1203_v7 = vpack.i.bf16 %v668_v63, %v684_v0 }
  0x85   :  { %v401_v19 = vpop.permute.xlu0 %400 }
  0x86   :  { %v321_v20 = vpop.permute.xlu1 %320  ;;  %v520_v24 = vmul.f32 %v401_v19, %v254_v14  ;;  %v243_v14 = vld [vmem:[%s1651_s0 + $0x30] sm:$0xff] }
  0x87   :  { %v504_v25 = vmul.f32 %v321_v20, %v238_v15  ;;  %v244_v15 = vld [vmem:[%s1651_s0 + $0x38] sm:$0xff] }
  0x88   :  { %804 = vxpose.xlu1.b32.end [6/6] (short) (narrow) %v730_v17, 32  ;;  %v1126_v28 = vpack.c.bf16 %v520_v24, %v519_v16  ;;  %1194 = vxpose.xlu0.b32.cont [9/16] (narrow) %v1193_v18, 32  ;;  %v1205_v17 = vpack.i.bf16 %v669_v10, %v685_v11  ;;  %v670_v20 = vld [vmem:[%s1650_s2 + $0x78] sm:$0xff]  ;;  %v261_v24 = vld [vmem:[%s1651_s0 + $0xc0] sm:$0xff]  ;;  %v251_v11 = vld [vmem:[%s1651_s0 + $0x70] sm:$0xff] }
  0x89   :  { %v1128_v29 = vpack.c.bf16 %v504_v25, %v503_v23  ;;  %v406_v31 = vpop.permute.xlu0 %405  ;;  %v262_v25 = vld [vmem:[%s1651_s0 + $0xc8] sm:$0xff] }
  0x8a   :  { %v411_v32 = vpop.permute.xlu1 %410  ;;  %v521_v35 = vmul.f32 %v406_v31, %v255_v26  ;;  %1127 = vmatprep.subr.bf16.mxu0 %v1126_v28 }
  0x8b   :  { %v522_v36 = vmul.f32 %v411_v32, %v256_v27  ;;  %1129 = vmatpush3.bf16.msra.mxu0 %v1128_v29  ;;  %v1207_v27 = vpack.i.bf16 %v670_v20, %v686_v21  ;;  %v245_v32 = vld [vmem:[%s1651_s0 + $0x40] sm:$0xff] }
  0x8c   :  { %1196 = vxpose.xlu0.b32.cont [10/16] (narrow) %v1195_v30, 32 }
  0x8d   :  { %v1130_v39 = vpack.c.bf16 %v522_v36, %v521_v35  ;;  %v326_v41 = vpop.permute.xlu0 %325 }
  0x8e   :  { %v331_v42 = vpop.permute.xlu1 %330  ;;  %v505_v45 = vmul.f32 %v326_v41, %v239_v37 }
  0x8f   :  { %v506_v46 = vmul.f32 %v331_v42, %v240_v38  ;;  %1131 = vmatprep.subr.bf16.mxu0 %v1130_v39  ;;  %v263_v39 = vld [vmem:[%s1651_s0 + $0xd0] sm:$0xff] }
  0x90   :  { %1198 = vxpose.xlu0.b32.cont [11/16] (narrow) %v1197_v40, 32  ;;  %v264_v40 = vld [vmem:[%s1651_s0 + $0xd8] sm:$0xff] }
  0x91   :  { %v1132_v49 = vpack.c.bf16 %v506_v46, %v505_v45  ;;  %v416_v51 = vpop.permute.xlu0 %415  ;;  %v247_v46 = vld [vmem:[%s1651_s0 + $0x50] sm:$0xff] }
  0x92   :  { %v421_v52 = vpop.permute.xlu1 %420  ;;  %v523_v55 = vmul.f32 %v416_v51, %v257_v47  ;;  %v248_v47 = vld [vmem:[%s1651_s0 + $0x58] sm:$0xff] }
  0x93   :  { %v524_v56 = vmul.f32 %v421_v52, %v258_v48  ;;  %1133 = vmatpush3.bf16.msra.mxu0 %v1132_v49 }
  0x94   :  { %1200 = vxpose.xlu0.b32.cont [12/16] (narrow) %v1199_v50, 32 }
  0x95   :  { %v1134_v59 = vpack.c.bf16 %v524_v56, %v523_v55  ;;  %v336_v61 = vpop.permute.xlu0 %335 }
  0x96   :  { %v341_v62 = vpop.permute.xlu1 %340  ;;  %v507_v1 = vmul.f32 %v336_v61, %v241_v57  ;;  %v250_v61 = vld [vmem:[%s1651_s0 + $0x68] sm:$0xff] }
  0x97   :  { %v508_v3 = vmul.f32 %v341_v62, %v242_v58  ;;  %1135 = vmatprep.subr.bf16.mxu0 %v1134_v59 }
  0x98   :  { %1202 = vxpose.xlu0.b32.cont [13/16] (narrow) %v1201_v60, 32  ;;  %v249_v60 = vld [vmem:[%s1651_s0 + $0x60] sm:$0xff] }
  0x99   :  { %v1136_v6 = vpack.c.bf16 %v508_v3, %v507_v1  ;;  %v426_v8 = vpop.permute.xlu0 %425 }
  0x9a   :  { %v431_v9 = vpop.permute.xlu1 %430  ;;  %v525_v12 = vmul.f32 %v426_v8, %v259_v4  ;;  %v267_v4 = vld [vmem:[%s1651_s0 + $0xf0] sm:$0xff] }
  0x9b   :  { %v526_v13 = vmul.f32 %v431_v9, %v260_v5  ;;  %1137 = vmatpush3.bf16.msra.mxu0 %v1136_v6  ;;  %v268_v5 = vld [vmem:[%s1651_s0 + $0xf8] sm:$0xff] }
  0x9c   :  { %1204 = vxpose.xlu0.b32.cont [14/16] (narrow) %v1203_v7, 32 }
  0x9d   :  { %v1138_v16 = vpack.c.bf16 %v526_v13, %v525_v12  ;;  %v346_v18 = vpop.permute.xlu0 %345  ;;  %v252_v12 = vld [vmem:[%s1651_s0 + $0x78] sm:$0xff] }
  0x9e   :  { %v351_v19 = vpop.permute.xlu1 %350  ;;  %v509_v22 = vmul.f32 %v346_v18, %v243_v14  ;;  %v269_v18 = vld [vmem:[%s1651_s0 + $0x100] sm:$0xff] }
  0x9f   :  { %v510_v23 = vmul.f32 %v351_v19, %v244_v15  ;;  %1139 = vmatprep.subr.bf16.mxu0 %v1138_v16  ;;  %v270_v19 = vld [vmem:[%s1651_s0 + $0x108] sm:$0xff] }
  0xa0   :  { %1206 = vxpose.xlu0.b32.cont [15/16] (narrow) %v1205_v17, 32 }
  0xa1   :  { %v1140_v26 = vpack.c.bf16 %v510_v23, %v509_v22  ;;  %v436_v28 = vpop.permute.xlu0 %435 }
  0xa2   :  { %v441_v29 = vpop.permute.xlu1 %440  ;;  %v527_v30 = vmul.f32 %v436_v28, %v261_v24 }
  0xa3   :  { %v528_v31 = vmul.f32 %v441_v29, %v262_v25  ;;  %1141 = vmatpush3.bf16.msra.mxu0 %v1140_v26  ;;  %v271_v25 = vld [vmem:[%s1651_s0 + $0x110] sm:$0xff]  ;;  %v272_v26 = vld [vmem:[%s1651_s0 + $0x118] sm:$0xff] }
  0xa4   :  { %1208 = vxpose.xlu0.b32.end [16/16] (narrow) %v1207_v27, 32 }
  0xa5   :  { %v1142_v34 = vpack.c.bf16 %v528_v31, %v527_v30  ;;  %v356_v35 = vpop.permute.xlu0 %355 }
  0xa6   :  { %v361_v36 = vpop.permute.xlu1 %360  ;;  %v511_v37 = vmul.f32 %v356_v35, %v245_v32  ;;  %v274_v32 = vld [vmem:[%s1651_s0 + $0x128] sm:$0xf] }
  0xa7   :  { %v512_v38 = vmul.f32 %v361_v36, %v246_v33  ;;  %1143 = vmatprep.subr.bf16.mxu0 %v1142_v34  ;;  %v273_v33 = vld [vmem:[%s1651_s0 + $0x120] sm:$0xff] }
  0xa9   :  { %v1144_v41 = vpack.c.bf16 %v512_v38, %v511_v37  ;;  %v446_v42 = vpop.permute.xlu0 %445 }
  0xaa   :  { %v451_v43 = vpop.permute.xlu1 %450  ;;  %v529_v44 = vmul.f32 %v446_v42, %v263_v39 }
  0xab   :  { %v530_v45 = vmul.f32 %v451_v43, %v264_v40  ;;  %1145 = vmatpush3.bf16.msra.mxu0 %v1144_v41 }
  0xad   :  { %v1146_v48 = vpack.c.bf16 %v530_v45, %v529_v44  ;;  %v366_v49 = vpop.permute.xlu0 %365 }
  0xae   :  { %v371_v50 = vpop.permute.xlu1 %370  ;;  %v513_v51 = vmul.f32 %v366_v49, %v247_v46 }
  0xaf   :  { %v514_v52 = vmul.f32 %v371_v50, %v248_v47  ;;  %1147 = vmatprep.subr.bf16.mxu0 %v1146_v48 }
  0xb1   :  { %v1148_v55 = vpack.c.bf16 %v514_v52, %v513_v51  ;;  %v456_v56 = vpop.permute.xlu0 %455 }
  0xb2   :  { %v461_v57 = vpop.permute.xlu1 %460  ;;  %v531_v58 = vmul.f32 %v456_v56, %v265_v53  ;;  %v1231_v56 = vmov 0.0  }
  0xb3   :  { %v532_v59 = vmul.f32 %v461_v57, %v266_v54  ;;  %1149 = vmatpush3.bf16.msra.mxu0 %v1148_v55  ;;  %116 = vst.msk [vmem:[%s1652_s3 + $0x8] sm:$0xff] %vm114_vm5, %v1231_v56  ;;  %115 = vst.msk [vmem:[%s1652_s3] sm:$0xff] %vm114_vm5, %v1231_v56 }
  0xb4   :  { %117 = vst.msk [vmem:[%s1652_s3 + $0x10] sm:$0xff] %vm114_vm5, %v1231_v56  ;;  %118 = vst.msk [vmem:[%s1652_s3 + $0x18] sm:$0xff] %vm114_vm5, %v1231_v56 }
  0xb5   :  { %v1150_v62 = vpack.c.bf16 %v532_v59, %v531_v58  ;;  %v376_v63 = vpop.permute.xlu0 %375 }
  0xb6   :  { %v381_v0 = vpop.permute.xlu1 %380  ;;  %v515_v1 = vmul.f32 %v376_v63, %v249_v60 }
  0xb7   :  { %v516_v3 = vmul.f32 %v381_v0, %v250_v61  ;;  %1151 = vmatprep.subr.bf16.mxu0 %v1150_v62 }
  0xb9   :  { %v1152_v6 = vpack.c.bf16 %v516_v3, %v515_v1  ;;  %v466_v7 = vpop.permute.xlu0 %465 }
  0xba   :  { %v471_v8 = vpop.permute.xlu1 %470  ;;  %v533_v9 = vmul.f32 %v466_v7, %v267_v4  ;;  %v732_v3 = vld [vmem:[%s1652_s3 + $0x8] sm:$0xff]  ;;  %v731_v7 = vld [vmem:[%s1652_s3] sm:$0xff] }
  0xbb   :  { %v534_v10 = vmul.f32 %v471_v8, %v268_v5  ;;  %1153 = vmatpush3.bf16.msra.mxu0 %v1152_v6 }
  0xbd   :  { %v1154_v13 = vpack.c.bf16 %v534_v10, %v533_v9  ;;  %v386_v14 = vpop.permute.xlu0 %385 }
  0xbe   :  { %v391_v15 = vpop.permute.xlu1 %390  ;;  %v517_v16 = vmul.f32 %v386_v14, %v251_v11  ;;  %v734_v14 = vld [vmem:[%s1652_s3 + $0x18] sm:$0xff] }
  0xbf   :  { %v518_v17 = vmul.f32 %v391_v15, %v252_v12  ;;  %1155 = vmatprep.subr.bf16.mxu0 %v1154_v13 }
  0xc1   :  { %v1156_v20 = vpack.c.bf16 %v518_v17, %v517_v16  ;;  %v476_v21 = vpop.permute.xlu0 %475  ;;  %v733_v17 = vld [vmem:[%s1652_s3 + $0x10] sm:$0xff] }
  0xc2   :  { %v481_v22 = vpop.permute.xlu1 %480  ;;  %v535_v23 = vmul.f32 %v476_v21, %v269_v18 }
  0xc3   :  { %v536_v24 = vmul.f32 %v481_v22, %v270_v19  ;;  %1157 = vmatpush3.bf16.msra.mxu0 %v1156_v20 }
  0xc5   :  { %v1158_v27 = vpack.c.bf16 %v536_v24, %v535_v23  ;;  %v486_v28 = vpop.permute.xlu0 %485 }
  0xc6   :  { %v491_v29 = vpop.permute.xlu1 %490  ;;  %v537_v30 = vmul.f32 %v486_v28, %v271_v25 }
  0xc7   :  { %v538_v31 = vmul.f32 %v491_v29, %v272_v26  ;;  %1159 = vmatprep.subr.bf16.mxu1 %v1158_v27 }
  0xc8   :  { %1161 = vmatpush3.bf16.msra.mxu1 %v1158_v27 }
  0xc9   :  { %v1162_v34 = vpack.c.bf16 %v538_v31, %v537_v30  ;;  %v501_v35 = vpop.permute.xlu0 %500 }
  0xca   :  { %v496_v36 = vpop.permute.xlu1 %495  ;;  %v540_v37 = vmul.f32 %v501_v35, %v274_v32 }
  0xcb   :  { %v539_v38 = vmul.f32 %v496_v36, %v273_v33  ;;  %1163 = vmatprep.subr.bf16.mxu1 %v1162_v34 }
  0xcc   :  { %1165 = vmatpush3.bf16.msra.mxu1 %v1162_v34  ;;  %v654_v39 = vsel %vm236_vm0, %v540_v37, 0.0 }
  0xcd   :  { %v1166_v40 = vpack.c.bf16 %v654_v39, %v539_v38 }
  0xcf   :  { %1168 = vmatprep.subr.msk.bf16.mxu1 %vm1167_vm3, %v1166_v40 }
  0xd0   :  { %1171 = vmatpush3.bf16.msk.msra.mxu1 %vm1167_vm3, %v1166_v40 }
  0xe8   :  { %v1209_v41 = vpop.trf.xlu0 }
  0xe9   :  { %v1210_v42 = vunpack.i.l.bf16 %v1209_v41  ;;  %v1213_v43 = vunpack.i.h.bf16 %v1209_v41 }
  0xeb   :  { %912 = vmatprep.mubr.f32.mxu0 %v1210_v42 }
  0xec   :  { %v1214_v44 = vpop.trf.xlu0  ;;  %913 = vmatmul.mubr.f32.vlgmr.msra.gmra.mrb[0].mxu0 %v1213_v43 }
  0xed   :  { %v1215_v45 = vunpack.i.l.bf16 %v1214_v44  ;;  %v1218_v46 = vunpack.i.h.bf16 %v1214_v44 }
  0xef   :  { %917 = vmatprep.mubr.f32.mxu0 %v1215_v45 }
  0xf0   :  { %v1219_v47 = vpop.trf.xlu0  ;;  %918 = vmatmul.mubr.f32.gmra.mrb[2].mxu0 %v1218_v46 }
  0xf1   :  { %v1220_v48 = vunpack.i.l.bf16 %v1219_v47  ;;  %v1223_v2 = vunpack.i.h.bf16 %v1219_v47 }
  0xf3   :  { %922 = vmatprep.mubr.f32.mxu0 %v1220_v48 }
  0xf4   :  { %v815_v49 = vpop.trf.xlu1  ;;  %v1224_v50 = vpop.trf.xlu0  ;;  %923 = vmatmul.mubr.f32.gmra.mrb[4].mxu0 %v1223_v2 }
  0xf5   :  { %1120 = vmatprep.mubr.msk.f32.mxu1 %vm831_vm4, %v815_v49  ;;  %v1228_v51 = vunpack.i.h.bf16 %v1224_v50  ;;  %v1225_v52 = vunpack.i.l.bf16 %v1224_v50 }
  0xf7   :  { %927 = vmatprep.mubr.f32.mxu0 %v1225_v52 }
  0xf8   :  { %v816_v53 = vpop.trf.xlu1  ;;  %928 = vmatmul.mubr.f32.gmra.mrb[6].mxu0 %v1228_v51 }
  0xf9   :  { %1121 = vmatmul.mubr.msk.f32.vlgmr.msra.gmra.mrb[0].mxu1 %vm831_vm4, %v816_v53 }
  0xfc   :  { %v817_v54 = vpop.trf.xlu1 }
  0xfd   :  { %1123 = vmatprep.mubr.msk.f32.mxu1 %vm831_vm4, %v817_v54 }
 0x100   :  { %v818_v55 = vpop.trf.xlu1 }
 0x101   :  { %1124 = vmatmul.mubr.msk.f32.gmra.mrb[2].mxu1 %vm831_vm4, %v818_v55 }
 0x1bf   :  { %v1086_v57 = vpop.f32.mrb[0].mxu0 }
 0x1c0   :  { %v1087_v58 = vpop.f32.mrb[1].mxu0 }
 0x1c1   :  { %v1088_v59 = vadd.f32 %v1087_v58, %v1086_v57 }
 0x1c3   :  { %v1089_v60 = vpop.f32.mrb[2].mxu0 }
 0x1c4   :  { %v1090_v61 = vpop.f32.mrb[3].mxu0 }
 0x1c5   :  { %v1091_v62 = vadd.f32 %v1090_v61, %v1089_v60 }
 0x1c7   :  { %v1092_v63 = vpop.f32.mrb[4].mxu0 }
 0x1c8   :  { %v1093_v0 = vpop.f32.mrb[5].mxu0 }
 0x1c9   :  { %v1094_v1 = vadd.f32 %v1093_v0, %v1092_v63 }
 0x1cb   :  { %v1095_v5 = vpop.f32.mrb[6].mxu0 }
 0x1cc   :  { %v1122_v4 = vpop.f32.mrb[0].mxu1  ;;  %v1096_v9 = vpop.f32.mrb[7].mxu0 }
 0x1cd   :  { %v1005_v6 = vadd.f32 %v1122_v4, %v1091_v62  ;;  %v999_v8 = vpop.f32.mrb[1].mxu1  ;;  %v1097_v11 = vadd.f32 %v1096_v9, %v1095_v5 }
 0x1ce   :  { %v1000_v10 = vadd.f32 %v1088_v59, %v999_v8 }
 0x1cf   :  { %v1019_v12 = vadd.f32 %v1005_v6, %v732_v3 }
 0x1d0   :  { %v1018_v13 = vadd.f32 %v1000_v10, %v731_v7 }
 0x1d1   :  { %1024 = vst.msk [vmem:[%s1652_s3 + $0x8] sm:$0xff] %vm114_vm5, %v1019_v12 }
 0x1d2   :  { %1023 = vst.msk [vmem:[%s1652_s3] sm:$0xff] %vm114_vm5, %v1018_v13 }
 0x1d4   :  { %v1125_v15 = vpop.f32.mrb[2].mxu1 }
 0x1d5   :  { %v1015_v16 = vadd.f32 %v1125_v15, %v1097_v11  ;;  %v1009_v18 = vpop.f32.mrb[3].mxu1 }
 0x1d6   :  { %v1010_v19 = vadd.f32 %v1094_v1, %v1009_v18 }
 0x1d7   :  { %v1021_v20 = vadd.f32 %v1015_v16, %v734_v14 }
 0x1d8   :  { %v1020_v21 = vadd.f32 %v1010_v19, %v733_v17 }
 0x1d9   :  { %1026 = vst.msk [vmem:[%s1652_s3 + $0x18] sm:$0xff] %vm114_vm5, %v1021_v20 }
 0x1da   :  { %1025 = vst.msk [vmem:[%s1652_s3 + $0x10] sm:$0xff] %vm114_vm5, %v1020_v21 }

</bundles_post_ra>
